<compile_context>
chip_gen: v5e
topology: v5e:2x2
jax: 0.10.0
libtpu: 0.0.40
codegen_flags: <defaults>
</compile_context>

<pallas_src>
import jax
import jax.numpy as jnp
from jax.experimental import pallas as pl
from jax.experimental.pallas import tpu as pltpu


def _filter_rxnfp_kernel(x_ref, wi_ref, bi_ref, wo_ref, bo_ref, o_ref):
    # In-kernel bf16 cast of the streamed f32 activations (hidden under MXU/DMA).
    x = x_ref[...].astype(jnp.bfloat16)
    # lin_i on the MXU: (TB, fp_dim) bf16 @ (fp_dim, dim) bf16 -> f32 accumulate.
    h = jnp.dot(x, wi_ref[...], preferred_element_type=jnp.float32)
    # dropout: identity in eval mode (training=False).
    # TODO(synk): training-mode dropout (pltpu.prng_random_bits mask) not emitted here.
    # bf16 tanh -> bf16 EUP path on v6e/v7x; epilogue math stays in f32.
    h = jnp.tanh((h + bi_ref[...]).astype(jnp.bfloat16)).astype(jnp.float32)
    # lin_o as lane-dense VPU multiply + XLU lane reduction against W_o (1, dim).
    out = jnp.sum(h * wo_ref[...], axis=-1, keepdims=True)
    o_ref[...] = out + bo_ref[0]


def _round_up(x, m):
    return (x + m - 1) // m * m


def filter_model_rxnfp_forward(rxn_fp, w_i_t, b_i, w_o_t, b_o, *, block_b=2048):
    """rxn_fp: (B, fp_dim) f32.  w_i_t: (fp_dim, dim).  b_i: (dim,).
    w_o_t: (dim, 1) or (dim,).  b_o: (1,).  Returns (B,) f32."""
    B, fp_dim = rxn_fp.shape
    dim = w_i_t.shape[1]

    # Batch tile: multiple of 8 (sublane), at most block_b rows.  The last grid
    # block may be partial; Pallas masks OOB output rows on writeback.
    TB = min(block_b, _round_up(B, 8))
    grid = (pl.cdiv(B, TB),)

    x = rxn_fp.astype(jnp.float32)                   # streamed as-is (no pad / no cast pass)
    wi = w_i_t.astype(jnp.bfloat16)                  # resident bf16 weights (one tiny cast)
    b_i2 = b_i.reshape(1, dim).astype(jnp.float32)
    w_o_row = jnp.reshape(w_o_t, (1, dim)).astype(jnp.float32)   # lane-dense (1, dim)
    b_o1 = b_o.reshape(1).astype(jnp.float32)        # SMEM scalar

    out = pl.pallas_call(
        _filter_rxnfp_kernel,
        out_shape=jax.ShapeDtypeStruct((B, 1), jnp.float32),
        grid_spec=pl.GridSpec(
            grid=grid,
            in_specs=[
                pl.BlockSpec((TB, fp_dim), lambda i: (i, 0)),       # streamed x (f32)
                pl.BlockSpec((fp_dim, dim), lambda i: (0, 0)),      # resident W_i (bf16)
                pl.BlockSpec((1, dim), lambda i: (0, 0)),           # resident b_i
                pl.BlockSpec((1, dim), lambda i: (0, 0)),           # resident W_o row
                pl.BlockSpec(memory_space=pltpu.MemorySpace.SMEM),  # b_o scalar
            ],
            out_specs=pl.BlockSpec((TB, 1), lambda i: (i, 0)),
        ),
        compiler_params=pltpu.CompilerParams(
            dimension_semantics=("parallel",),
            # ~14 MB working set at TB=2048 (2x2 MB double-buffered x blocks
            # + 8 MB f32 h + ~1 MB weights).  32 MiB clears v5e's 16 MiB
            # scoped default and stays within v7x's 64 MiB physical VMEM.
            vmem_limit_bytes=32 * 1024 * 1024,
        ),
    )(x, wi, b_i2, w_o_row, b_o1)

    return out.reshape(-1)  # == .view(-1)


def init_params(key, fp_dim=256, dim=1024):
    """Deterministic synthetic init matching nn.Linear parameter shapes."""
    k1, k2, k3, k4 = jax.random.split(key, 4)
    # lin_i: weight (dim, fp_dim), bias (dim,) -> store weight transposed (fp_dim, dim)
    bound_i = 1.0 / jnp.sqrt(fp_dim)
    w_i_t = jax.random.uniform(k1, (fp_dim, dim), jnp.float32, -bound_i, bound_i)
    b_i = jax.random.uniform(k2, (dim,), jnp.float32, -bound_i, bound_i)
    # lin_o: weight (1, dim), bias (1,) -> store weight transposed (dim, 1)
    bound_o = 1.0 / jnp.sqrt(dim)
    w_o_t = jax.random.uniform(k3, (dim, 1), jnp.float32, -bound_o, bound_o)
    b_o = jax.random.uniform(k4, (1,), jnp.float32, -bound_o, bound_o)
    return w_i_t, b_i, w_o_t, b_o


def _reference_f32(rxn_fp, w_i_t, b_i, w_o_t, b_o):
    # True f32 PyTorch semantics (eval mode).
    h = jnp.tanh(rxn_fp @ w_i_t + b_i)
    return (h @ w_o_t.reshape(-1, 1) + b_o).reshape(-1)


def _reference_matched(rxn_fp, w_i_t, b_i, w_o_t, b_o):
    # Mirrors the kernel's rounding (bf16 matmul inputs, bf16 tanh, f32
    # accumulation / epilogue) for a tighter plumbing check.
    x32 = rxn_fp.astype(jnp.bfloat16).astype(jnp.float32)
    wi32 = w_i_t.astype(jnp.bfloat16).astype(jnp.float32)
    h = x32 @ wi32 + b_i
    h = jnp.tanh(h.astype(jnp.bfloat16)).astype(jnp.float32)
    return (h @ w_o_t.reshape(-1, 1) + b_o).reshape(-1)


if __name__ == "__main__":
    fp_dim, dim = 256, 1024  # module defaults

    key = jax.random.PRNGKey(0)
    k_x, k_p, k_x2 = jax.random.split(key, 3)
    w_i_t, b_i, w_o_t, b_o = init_params(k_p, fp_dim=fp_dim, dim=dim)

    # Small-batch case (single block covering the full array).
    batch = 8
    rxn_fp = jax.random.normal(k_x, (batch, fp_dim), jnp.float32)
    out = jax.block_until_ready(
        filter_model_rxnfp_forward(rxn_fp, w_i_t, b_i, w_o_t, b_o))
    assert out.shape == (batch,)
    ref_m = _reference_matched(rxn_fp, w_i_t, b_i, w_o_t, b_o)
    ref_f = _reference_f32(rxn_fp, w_i_t, b_i, w_o_t, b_o)
    assert jnp.allclose(out, ref_m, atol=2e-2, rtol=2e-2)
    assert jnp.allclose(out, ref_f, atol=6e-2, rtol=6e-2)

    # Multi-block case with a partial last block (B=300, TB=128 -> grid=(3,)).
    batch2 = 300
    rxn_fp2 = jax.random.normal(k_x2, (batch2, fp_dim), jnp.float32)
    out2 = jax.block_until_ready(
        filter_model_rxnfp_forward(rxn_fp2, w_i_t, b_i, w_o_t, b_o, block_b=128))
    assert out2.shape == (batch2,)
    ref2_m = _reference_matched(rxn_fp2, w_i_t, b_i, w_o_t, b_o)
    ref2_f = _reference_f32(rxn_fp2, w_i_t, b_i, w_o_t, b_o)
    assert jnp.allclose(out2, ref2_m, atol=2e-2, rtol=2e-2)
    assert jnp.allclose(out2, ref2_f, atol=6e-2, rtol=6e-2)

    print("KERNEL_OK")
</pallas_src>

<mosaic_0001>
module attributes {stable_mosaic.version = 11 : i64} {
  func.func @_filter_rxnfp_kernel(%arg0: i32, %arg1: memref<8x256xf32, #tpu.memory_space<vmem>>, %arg2: memref<256x1024xbf16, #tpu.memory_space<vmem>>, %arg3: memref<1x1024xf32, #tpu.memory_space<vmem>>, %arg4: memref<1x1024xf32, #tpu.memory_space<vmem>>, %arg5: memref<1xf32, #tpu.memory_space<smem>>, %arg6: memref<8x1xf32, #tpu.memory_space<vmem>>) attributes {dimension_semantics = [#tpu.dimension_semantics<parallel>], iteration_bounds = array<i64: 1>, scalar_prefetch = 0 : i64, scratch_operands = 0 : i64, tpu.core_type = #tpu.core_type<tc>, window_params = [{transform_indices = @transform_0, window_bounds = array<i64: 8, 256>}, {pipeline_mode = #tpu.pipeline_mode<synchronous>, transform_indices = @transform_1, window_bounds = array<i64: 256, 1024>}, {pipeline_mode = #tpu.pipeline_mode<synchronous>, transform_indices = @transform_2, window_bounds = array<i64: 1, 1024>}, {pipeline_mode = #tpu.pipeline_mode<synchronous>, transform_indices = @transform_3, window_bounds = array<i64: 1, 1024>}, {transform_indices = @transform_4, window_bounds = array<i64: 1>}, {transform_indices = @transform_5, window_bounds = array<i64: 8, 1>}]} {
    %c0 = arith.constant 0 : index
    %c0_0 = arith.constant 0 : index
    %0 = vector.load %arg1[%c0, %c0_0] : memref<8x256xf32, #tpu.memory_space<vmem>>, vector<8x256xf32>
    %1 = arith.truncf %0 : vector<8x256xf32> to vector<8x256xbf16>
    %c0_1 = arith.constant 0 : index
    %c0_2 = arith.constant 0 : index
    %2 = vector.load %arg2[%c0_1, %c0_2] : memref<256x1024xbf16, #tpu.memory_space<vmem>>, vector<256x1024xbf16>
    %cst = arith.constant dense<0.000000e+00> : vector<8x1024xf32>
    %3 = tpu.matmul %1, %2, %cst {dimension_numbers = #tpu.dot_dimension_numbers<[1], [0], [0], [1], [0, 0, 1, 1], [], []>} : vector<8x256xbf16>, vector<256x1024xbf16>, vector<8x1024xf32> -> vector<8x1024xf32>
    %c0_3 = arith.constant 0 : index
    %c0_4 = arith.constant 0 : index
    %4 = vector.load %arg3[%c0_3, %c0_4] : memref<1x1024xf32, #tpu.memory_space<vmem>>, vector<1x1024xf32>
    %5 = vector.broadcast %4 : vector<1x1024xf32> to vector<8x1024xf32>
    %6 = arith.addf %3, %5 : vector<8x1024xf32>
    %7 = arith.truncf %6 : vector<8x1024xf32> to vector<8x1024xbf16>
    %8 = math.tanh %7 : vector<8x1024xbf16>
    %9 = arith.extf %8 : vector<8x1024xbf16> to vector<8x1024xf32>
    %c0_5 = arith.constant 0 : index
    %c0_6 = arith.constant 0 : index
    %10 = vector.load %arg4[%c0_5, %c0_6] : memref<1x1024xf32, #tpu.memory_space<vmem>>, vector<1x1024xf32>
    %11 = vector.broadcast %10 : vector<1x1024xf32> to vector<8x1024xf32>
    %12 = arith.mulf %9, %11 : vector<8x1024xf32>
    %cst_7 = arith.constant dense<0.000000e+00> : vector<8xf32>
    %13 = vector.multi_reduction <add>, %12, %cst_7 [1] : vector<8x1024xf32> to vector<8xf32>
    %14 = vector.shape_cast %13 : vector<8xf32> to vector<8x1xf32>
    %c0_8 = arith.constant 0 : index
    %15 = memref.load %arg5[%c0_8] : memref<1xf32, #tpu.memory_space<smem>>
    %16 = vector.broadcast %15 : f32 to vector<8x1xf32>
    %17 = arith.addf %14, %16 : vector<8x1xf32>
    %c0_9 = arith.constant 0 : index
    %c0_10 = arith.constant 0 : index
    %18 = vector.load %arg6[%c0_9, %c0_10] : memref<8x1xf32, #tpu.memory_space<vmem>>, vector<8x1xf32>
    tpu.vector_store %arg6[%c0_9, %c0_10], %17 {strides = array<i32>} : memref<8x1xf32, #tpu.memory_space<vmem>>, vector<8x1xf32>,
    return
  }
  func.func @transform_0(%arg0: i32) -> (i32, i32) {
    %c0_i32 = arith.constant 0 : i32
    %c0_i32_0 = arith.constant 0 : i32
    return %arg0, %c0_i32 : i32, i32
  }
  func.func @transform_1(%arg0: i32) -> (i32, i32) {
    %c0_i32 = arith.constant 0 : i32
    %c0_i32_0 = arith.constant 0 : i32
    %c0_i32_1 = arith.constant 0 : i32
    return %c0_i32, %c0_i32_0 : i32, i32
  }
  func.func @transform_2(%arg0: i32) -> (i32, i32) {
    %c0_i32 = arith.constant 0 : i32
    %c0_i32_0 = arith.constant 0 : i32
    %c0_i32_1 = arith.constant 0 : i32
    return %c0_i32, %c0_i32_0 : i32, i32
  }
  func.func @transform_3(%arg0: i32) -> (i32, i32) {
    %c0_i32 = arith.constant 0 : i32
    %c0_i32_0 = arith.constant 0 : i32
    %c0_i32_1 = arith.constant 0 : i32
    return %c0_i32, %c0_i32_0 : i32, i32
  }
  func.func @transform_4(%arg0: i32) -> i32 {
    %c0_i32 = arith.constant 0 : i32
    %c0_i32_0 = arith.constant 0 : i32
    return %c0_i32 : i32
  }
  func.func @transform_5(%arg0: i32) -> (i32, i32) {
    %c0_i32 = arith.constant 0 : i32
    %c0_i32_0 = arith.constant 0 : i32
    return %arg0, %c0_i32 : i32, i32
  }
}

</mosaic_0001>

<bundles_post_ra>
// kernel: tpu_custom_call.1
= control target key start
LH: loop header
LB: loop body
LE: loop exit
PB: predicated region body
PF: predicated region fallthrough
CT: control target
= control target key end

     0   :  { %11 = vsyncpa [#allocation4], 0  ;;  %s2003_s0 = inlined_call_operand.hbm [shape: f32[8,256], index: 0, kind: input, shape index: {}]   ;;  %s2004_s1 = inlined_call_operand.hbm [shape: bf16[256,1024], index: 1, kind: input, shape index: {}]   ;;  %s2005_s2 = inlined_call_operand.hbm [shape: f32[1,1024], index: 2, kind: input, shape index: {}]   ;;  %s2006_s3 = inlined_call_operand.hbm [shape: f32[1,1024], index: 3, kind: input, shape index: {}]   ;;  %s2007_s4 = inlined_call_operand.<no memory space> [shape: f32[1], index: 4, kind: input, shape index: {}]   ;;  %s2008_s5 = inlined_call_operand.vmem [shape: f32[8,1], index: 5, kind: output, shape index: {}]  }
   0x1   :  { %12 = vsyncpa [#allocation6], 0  ;;  %s29_s20 = sshll.u32 %s2004_s1, 4  ;;  %s30_s20 = int_to_ptr.hbm [resolvable:$true] %s29_s20 }
   0x2   :  { %13 = vsyncpa [#allocation9], 0  ;;  %s1919_s21 = smov [#allocation5]   ;;  %s19_s25 = sshll.u32 %s2003_s0, 4  ;;  %s20_s25 = int_to_ptr.hbm [resolvable:$true] %s19_s25 }
   0x3   :  { %s31_s22 = sshll.u32 %s1919_s21, 4  ;;  %s1920_s26 = smov 512   ;;  %s32_s22 = int_to_ptr.vmem [resolvable:$true] %s31_s22 }
   0x4   :  { %s1921_s27 = smov 32   ;;  %s1922_s28 = smov [#allocation3]  }
   0x5   :  { %37 = dma.hbm_to_vmem [thread:$0]  %s30_s20, 16384, %s32_s22, [#allocation6], %s1920_s26, %s1920_s26, %s1921_s27  }
   0x6   :  { %s21_s29 = sshll.u32 %s1922_s28, 4  ;;  %s43_s7 = sshll.u32 %s2005_s2, 4  ;;  %s22_s29 = int_to_ptr.vmem [resolvable:$true] %s21_s29  ;;  %s44_s7 = int_to_ptr.hbm [resolvable:$true] %s43_s7 }
   0x7   :  { %24 = dma.hbm_to_vmem [thread:$0]  %s20_s25, 256, %s22_s29, [#allocation4]  }
   0x8   :  { %s54_s9 = sshll.u32 %s2006_s3, 4  ;;  %s1923_s10 = smov [#allocation7]   ;;  %s55_s9 = int_to_ptr.hbm [resolvable:$true] %s54_s9 }
   0x9   :  { %s45_s11 = sshll.u32 %s1923_s10, 4  ;;  %s1924_s0 = smov [#allocation8]   ;;  %s46_s11 = int_to_ptr.vmem [resolvable:$true] %s45_s11 }
   0xa   :  { %48 = dma.hbm_to_vmem [thread:$0]  %s44_s7, 128, %s46_s11, [#allocation6]  }
   0xb   :  { %s56_s12 = sshll.u32 %s1924_s0, 4  ;;  %s57_s12 = int_to_ptr.vmem [resolvable:$true] %s56_s12 }
   0xc   :  { %59 = dma.hbm_to_vmem [thread:$0]  %s55_s9, 128, %s57_s12, [#allocation9]  }
   0xd   :  { %1913 = dma.done.wait [#allocation4], 256  }
   0xe   :  { %1914 = vsyncadd [#allocation4], 4294967040 }
   0xf   :  { %1915 = dma.done.wait [#allocation6], 16512  }
  0x10   :  { %1916 = vsyncadd [#allocation6], 4294950784 }
  0x11   :  { %1917 = dma.done.wait [#allocation9], 128  }
  0x12   :  { %1918 = vsyncadd [#allocation9], 4294967168  ;;  %v1381_v0 = vld [vmem:[#allocation5 + $0x1c0] sm:$0xf]  ;;  %v1723_v5 = vld [vmem:[#allocation5 + $0x1c4] sm:$0xf] }
  0x13   :  { %v1727_v1 = vld [vmem:[#allocation5 + $0x1dc] sm:$0xf0]  ;;  %v1383_v6 = vld [vmem:[#allocation5 + $0x1e0] sm:$0xf0]  ;;  %vm1146_vm0 = vcmask 7168  }
  0x14   :  { %v1637_v2 = vld [vmem:[#allocation5 + $0x3c0] sm:$0xf]  ;;  %v1382_v3 = vor.u32 %v1727_v1, %v1381_v0  ;;  %v1386_v8 = vor.u32 %v1723_v5, %v1383_v6  ;;  %v1787_v9 = vld [vmem:[#allocation5 + $0x3c4] sm:$0xf] }
  0x15   :  { %v1791_v4 = vld [vmem:[#allocation5 + $0x3dc] sm:$0xf0]  ;;  %v1639_v10 = vld [vmem:[#allocation5 + $0x3e0] sm:$0xf0] }
  0x16   :  { %v1638_v7 = vor.u32 %v1791_v4, %v1637_v2  ;;  %v1349_v11 = vld [vmem:[#allocation5 + $0x180] sm:$0xf]  ;;  %868 = vmatpush.bf16.msra.mxu0 %v1382_v3  ;;  %v1642_v12 = vor.u32 %v1787_v9, %v1639_v10  ;;  %894 = vmatpush.bf16.msra.mxu2 %v1386_v8  ;;  %v1715_v18 = vld [vmem:[#allocation5 + $0x184] sm:$0xf] }
  0x17   :  { %v1719_v13 = vld [vmem:[#allocation5 + $0x19c] sm:$0xf0]  ;;  %v1351_v19 = vld [vmem:[#allocation5 + $0x1a0] sm:$0xf0] }
  0x18   :  { %v1605_v14 = vld [vmem:[#allocation5 + $0x380] sm:$0xf]  ;;  %881 = vmatpush.bf16.msra.mxu1 %v1638_v7  ;;  %v1350_v16 = vor.u32 %v1719_v13, %v1349_v11  ;;  %v1779_v20 = vld [vmem:[#allocation5 + $0x384] sm:$0xf]  ;;  %907 = vmatpush.bf16.msra.mxu3 %v1642_v12  ;;  %v1354_v21 = vor.u32 %v1715_v18, %v1351_v19 }
  0x19   :  { %v1783_v15 = vld [vmem:[#allocation5 + $0x39c] sm:$0xf0]  ;;  %v1607_v22 = vld [vmem:[#allocation5 + $0x3a0] sm:$0xf0] }
  0x1a   :  { %v1606_v17 = vor.u32 %v1783_v15, %v1605_v14  ;;  %v1317_v23 = vld [vmem:[#allocation5 + $0x140] sm:$0xf]  ;;  %v1610_v25 = vor.u32 %v1779_v20, %v1607_v22  ;;  %v1707_v28 = vld [vmem:[#allocation5 + $0x144] sm:$0xf]  ;;  %869 = vmatpush.bf16.msra.mxu0 %v1350_v16  ;;  %895 = vmatpush.bf16.msra.mxu2 %v1354_v21 }
  0x1b   :  { %v1711_v24 = vld [vmem:[#allocation5 + $0x15c] sm:$0xf0]  ;;  %v1319_v30 = vld [vmem:[#allocation5 + $0x160] sm:$0xf0] }
  0x1c   :  { %v1573_v26 = vld [vmem:[#allocation5 + $0x340] sm:$0xf]  ;;  %v1318_v29 = vor.u32 %v1711_v24, %v1317_v23  ;;  %v1771_v31 = vld [vmem:[#allocation5 + $0x344] sm:$0xf]  ;;  %882 = vmatpush.bf16.msra.mxu1 %v1606_v17  ;;  %v1322_v34 = vor.u32 %v1707_v28, %v1319_v30  ;;  %908 = vmatpush.bf16.msra.mxu3 %v1610_v25  ;;  %v1389_v28 = vld [vmem:[#allocation5 + $0x1c8] sm:$0xf] }
  0x1d   :  { %v1775_v27 = vld [vmem:[#allocation5 + $0x35c] sm:$0xf0]  ;;  %v1575_v32 = vld [vmem:[#allocation5 + $0x360] sm:$0xf0]  ;;  %v1645_v30 = vld [vmem:[#allocation5 + $0x3c8] sm:$0xf] }
  0x1e   :  { %v1574_v33 = vor.u32 %v1775_v27, %v1573_v26  ;;  %v1285_v35 = vld [vmem:[#allocation5 + $0x100] sm:$0xf]  ;;  %v1578_v38 = vor.u32 %v1771_v31, %v1575_v32  ;;  %v1699_v40 = vld [vmem:[#allocation5 + $0x104] sm:$0xf]  ;;  %870 = vmatpush.bf16.msra.mxu0 %v1318_v29  ;;  %896 = vmatpush.bf16.msra.mxu2 %v1322_v34  ;;  %v1728_v29 = vld [vmem:[#allocation5 + $0x1e4] sm:$0xf0] }
  0x1f   :  { %v1703_v36 = vld [vmem:[#allocation5 + $0x11c] sm:$0xf0]  ;;  %v1287_v41 = vld [vmem:[#allocation5 + $0x120] sm:$0xf0]  ;;  %v1792_v32 = vld [vmem:[#allocation5 + $0x3e4] sm:$0xf0] }
  0x20   :  { %v1541_v37 = vld [vmem:[#allocation5 + $0x300] sm:$0xf]  ;;  %v1763_v42 = vld [vmem:[#allocation5 + $0x304] sm:$0xf]  ;;  %v1286_v44 = vor.u32 %v1703_v36, %v1285_v35  ;;  %883 = vmatpush.bf16.msra.mxu1 %v1574_v33  ;;  %v1290_v46 = vor.u32 %v1699_v40, %v1287_v41  ;;  %909 = vmatpush.bf16.msra.mxu3 %v1578_v38  ;;  %v1724_v33 = vld [vmem:[#allocation5 + $0x1cc] sm:$0xf]  ;;  %v1390_v40 = vor.u32 %v1728_v29, %v1389_v28 }
  0x21   :  { %v1767_v39 = vld [vmem:[#allocation5 + $0x31c] sm:$0xf0]  ;;  %v1543_v43 = vld [vmem:[#allocation5 + $0x320] sm:$0xf0]  ;;  %v1391_v34 = vld [vmem:[#allocation5 + $0x1e8] sm:$0xf0]  ;;  %v1646_v41 = vor.u32 %v1792_v32, %v1645_v30 }
  0x22   :  { %v1542_v45 = vor.u32 %v1767_v39, %v1541_v37  ;;  %v1253_v47 = vld [vmem:[#allocation5 + $0xc0] sm:$0xf]  ;;  %v1546_v50 = vor.u32 %v1763_v42, %v1543_v43  ;;  %v1691_v52 = vld [vmem:[#allocation5 + $0xc4] sm:$0xf]  ;;  %871 = vmatpush.bf16.msra.mxu0 %v1286_v44  ;;  %897 = vmatpush.bf16.msra.mxu2 %v1290_v46  ;;  %v1788_v37 = vld [vmem:[#allocation5 + $0x3cc] sm:$0xf]  ;;  %v1394_v42 = vor.u32 %v1724_v33, %v1391_v34 }
  0x23   :  { %v1695_v48 = vld [vmem:[#allocation5 + $0xdc] sm:$0xf0]  ;;  %v1255_v53 = vld [vmem:[#allocation5 + $0xe0] sm:$0xf0]  ;;  %v1647_v38 = vld [vmem:[#allocation5 + $0x3e8] sm:$0xf0] }
  0x24   :  { %v1509_v49 = vld [vmem:[#allocation5 + $0x2c0] sm:$0xf]  ;;  %v1755_v54 = vld [vmem:[#allocation5 + $0x2c4] sm:$0xf]  ;;  %v1254_v56 = vor.u32 %v1695_v48, %v1253_v47  ;;  %884 = vmatpush.bf16.msra.mxu1 %v1542_v45  ;;  %v1258_v58 = vor.u32 %v1691_v52, %v1255_v53  ;;  %910 = vmatpush.bf16.msra.mxu3 %v1546_v50  ;;  %v1357_v43 = vld [vmem:[#allocation5 + $0x188] sm:$0xf]  ;;  %v1650_v46 = vor.u32 %v1788_v37, %v1647_v38 }
  0x25   :  { %v1759_v51 = vld [vmem:[#allocation5 + $0x2dc] sm:$0xf0]  ;;  %v1511_v55 = vld [vmem:[#allocation5 + $0x2e0] sm:$0xf0]  ;;  %v1720_v44 = vld [vmem:[#allocation5 + $0x1a4] sm:$0xf0] }
  0x26   :  { %v1510_v57 = vor.u32 %v1759_v51, %v1509_v49  ;;  %v1221_v59 = vld [vmem:[#allocation5 + $0x80] sm:$0xf]  ;;  %v1514_v62 = vor.u32 %v1755_v54, %v1511_v55  ;;  %v1683_v0 = vld [vmem:[#allocation5 + $0x84] sm:$0xf]  ;;  %872 = vmatpush.bf16.msra.mxu0 %v1254_v56  ;;  %898 = vmatpush.bf16.msra.mxu2 %v1258_v58  ;;  %v1613_v45 = vld [vmem:[#allocation5 + $0x388] sm:$0xf]  ;;  %v1358_v53 = vor.u32 %v1720_v44, %v1357_v43 }
  0x27   :  { %v1687_v60 = vld [vmem:[#allocation5 + $0x9c] sm:$0xf0]  ;;  %v1223_v1 = vld [vmem:[#allocation5 + $0xa0] sm:$0xf0]  ;;  %v1784_v47 = vld [vmem:[#allocation5 + $0x3a4] sm:$0xf0] }
  0x28   :  { %v1477_v61 = vld [vmem:[#allocation5 + $0x280] sm:$0xf]  ;;  %v1747_v2 = vld [vmem:[#allocation5 + $0x284] sm:$0xf]  ;;  %v1222_v4 = vor.u32 %v1687_v60, %v1221_v59  ;;  %885 = vmatpush.bf16.msra.mxu1 %v1510_v57  ;;  %v1226_v6 = vor.u32 %v1683_v0, %v1223_v1  ;;  %911 = vmatpush.bf16.msra.mxu3 %v1514_v62  ;;  %v1716_v48 = vld [vmem:[#allocation5 + $0x18c] sm:$0xf]  ;;  %v1614_v56 = vor.u32 %v1784_v47, %v1613_v45 }
  0x29   :  { %v1751_v63 = vld [vmem:[#allocation5 + $0x29c] sm:$0xf0]  ;;  %v1479_v3 = vld [vmem:[#allocation5 + $0x2a0] sm:$0xf0]  ;;  %v1359_v49 = vld [vmem:[#allocation5 + $0x1a8] sm:$0xf0] }
  0x2a   :  { %v1478_v5 = vor.u32 %v1751_v63, %v1477_v61  ;;  %v1189_v7 = vld [vmem:[#allocation5 + $0x40] sm:$0xf]  ;;  %v1482_v10 = vor.u32 %v1747_v2, %v1479_v3  ;;  %v1675_v12 = vld [vmem:[#allocation5 + $0x44] sm:$0xf]  ;;  %873 = vmatpush.bf16.msra.mxu0 %v1222_v4  ;;  %899 = vmatpush.bf16.msra.mxu2 %v1226_v6  ;;  %v1780_v50 = vld [vmem:[#allocation5 + $0x38c] sm:$0xf]  ;;  %v1362_v57 = vor.u32 %v1716_v48, %v1359_v49 }
  0x2b   :  { %v1679_v8 = vld [vmem:[#allocation5 + $0x5c] sm:$0xf0]  ;;  %v1191_v13 = vld [vmem:[#allocation5 + $0x60] sm:$0xf0]  ;;  %v1615_v51 = vld [vmem:[#allocation5 + $0x3a8] sm:$0xf0] }
  0x2c   :  { %v1445_v9 = vld [vmem:[#allocation5 + $0x240] sm:$0xf]  ;;  %v1739_v14 = vld [vmem:[#allocation5 + $0x244] sm:$0xf]  ;;  %v1190_v16 = vor.u32 %v1679_v8, %v1189_v7  ;;  %886 = vmatpush.bf16.msra.mxu1 %v1478_v5  ;;  %v1194_v20 = vor.u32 %v1675_v12, %v1191_v13  ;;  %912 = vmatpush.bf16.msra.mxu3 %v1482_v10  ;;  %v78_v52 = vld [vmem:[#allocation3] sm:$0xff]  ;;  %v1618_v61 = vor.u32 %v1780_v50, %v1615_v51 }
  0x2d   :  { %v1743_v11 = vld [vmem:[#allocation5 + $0x25c] sm:$0xf0]  ;;  %v1447_v15 = vld [vmem:[#allocation5 + $0x260] sm:$0xf0]  ;;  %v1325_v54 = vld [vmem:[#allocation5 + $0x148] sm:$0xf]  ;;  %v1967_v55 = vpack.c.bf16 %v78_v52, %v78_v52 }
  0x2e   :  { %v1157_v17 = vld [vmem:[#allocation5] sm:$0xf]  ;;  %v1446_v19 = vor.u32 %v1743_v11, %v1445_v9  ;;  %v1667_v23 = vld [vmem:[#allocation5 + $0x4] sm:$0xf]  ;;  %v1450_v24 = vor.u32 %v1739_v14, %v1447_v15  ;;  %874 = vmatpush.bf16.msra.mxu0 %v1190_v16  ;;  %900 = vmatpush.bf16.msra.mxu2 %v1194_v20  ;;  %v1712_v58 = vld [vmem:[#allocation5 + $0x164] sm:$0xf0] }
  0x2f   :  { %v1671_v18 = vld [vmem:[#allocation5 + $0x1c] sm:$0xf0]  ;;  %v1159_v25 = vld [vmem:[#allocation5 + $0x20] sm:$0xf0]  ;;  %v1581_v59 = vld [vmem:[#allocation5 + $0x348] sm:$0xf]  ;;  %v1326_v4 = vor.u32 %v1712_v58, %v1325_v54 }
  0x30   :  { %v1413_v21 = vld [vmem:[#allocation5 + $0x200] sm:$0xf]  ;;  %v1731_v26 = vld [vmem:[#allocation5 + $0x204] sm:$0xf]  ;;  %v1158_v31 = vor.u32 %v1671_v18, %v1157_v17  ;;  %887 = vmatpush.bf16.msra.mxu1 %v1446_v19  ;;  %v1162_v36 = vor.u32 %v1667_v23, %v1159_v25  ;;  %913 = vmatpush.bf16.msra.mxu3 %v1450_v24  ;;  %v1776_v60 = vld [vmem:[#allocation5 + $0x364] sm:$0xf0] }
  0x31   :  { %v1735_v22 = vld [vmem:[#allocation5 + $0x21c] sm:$0xf0]  ;;  %v1415_v27 = vld [vmem:[#allocation5 + $0x220] sm:$0xf0]  ;;  %v1708_v62 = vld [vmem:[#allocation5 + $0x14c] sm:$0xf]  ;;  %v1582_v5 = vor.u32 %v1776_v60, %v1581_v59 }
  0x32   :  { %v1414_v35 = vor.u32 %v1735_v22, %v1413_v21  ;;  %v1418_v39 = vor.u32 %v1731_v26, %v1415_v27  ;;  %875 = vmatpush.bf16.msra.mxu0 %v1158_v31  ;;  %901 = vmatpush.bf16.msra.mxu2 %v1162_v36  ;;  %v1327_v63 = vld [vmem:[#allocation5 + $0x168] sm:$0xf0]  ;;  %v79_v0 = vld [vmem:[#allocation3 + $0x8] sm:$0xff]  ;;  %v1293_v7 = vld [vmem:[#allocation5 + $0x108] sm:$0xf] }
  0x33   :  { %v1772_v1 = vld [vmem:[#allocation5 + $0x34c] sm:$0xf]  ;;  %v1970_v3 = vpack.c.bf16 %v79_v0, %v79_v0  ;;  %v1330_v6 = vor.u32 %v1708_v62, %v1327_v63  ;;  %v1704_v8 = vld [vmem:[#allocation5 + $0x124] sm:$0xf0] }
  0x34   :  { %888 = vmatpush.bf16.msra.mxu1 %v1414_v35  ;;  %914 = vmatpush.bf16.msra.mxu3 %v1418_v39  ;;  %v1583_v2 = vld [vmem:[#allocation5 + $0x368] sm:$0xf0]  ;;  %v1549_v9 = vld [vmem:[#allocation5 + $0x308] sm:$0xf]  ;;  %v1294_v16 = vor.u32 %v1704_v8, %v1293_v7  ;;  %v1725_v7 = vld [vmem:[#allocation5 + $0x1d4] sm:$0xf] }
  0x35   :  { %902 = vmatmul.bf16.vlgmr.msra.gmra.mxu2 %v1967_v55  ;;  %876 = vmatmul.bf16.vlgmr.msra.gmra.mxu0 %v1967_v55  ;;  %v1586_v10 = vor.u32 %v1772_v1, %v1583_v2  ;;  %v1768_v11 = vld [vmem:[#allocation5 + $0x324] sm:$0xf0]  ;;  %v1700_v12 = vld [vmem:[#allocation5 + $0x10c] sm:$0xf]  ;;  %v1397_v1 = vld [vmem:[#allocation5 + $0x1d0] sm:$0xf] }
  0x36   :  { %920 = vmatpush.bf16.msrb.mxu0 %v1390_v40  ;;  %946 = vmatpush.bf16.msrb.mxu2 %v1394_v42  ;;  %v1295_v13 = vld [vmem:[#allocation5 + $0x128] sm:$0xf0]  ;;  %v1550_v17 = vor.u32 %v1768_v11, %v1549_v9  ;;  %v1261_v19 = vld [vmem:[#allocation5 + $0xc8] sm:$0xf]  ;;  %v1729_v2 = vld [vmem:[#allocation5 + $0x1ec] sm:$0xf0] }
  0x37   :  { %889 = vmatmul.bf16.vlgmr.msra.gmra.mxu1 %v1970_v3  ;;  %v1764_v14 = vld [vmem:[#allocation5 + $0x30c] sm:$0xf]  ;;  %915 = vmatmul.bf16.vlgmr.msra.gmra.mxu3 %v1970_v3  ;;  %v1298_v18 = vor.u32 %v1700_v12, %v1295_v13  ;;  %v1696_v20 = vld [vmem:[#allocation5 + $0xe4] sm:$0xf0]  ;;  %v1399_v8 = vld [vmem:[#allocation5 + $0x1f0] sm:$0xf0] }
  0x38   :  { %933 = vmatpush.bf16.msrb.mxu1 %v1646_v41  ;;  %959 = vmatpush.bf16.msrb.mxu3 %v1650_v46  ;;  %v1551_v15 = vld [vmem:[#allocation5 + $0x328] sm:$0xf0]  ;;  %v1517_v21 = vld [vmem:[#allocation5 + $0x2c8] sm:$0xf]  ;;  %v1262_v28 = vor.u32 %v1696_v20, %v1261_v19  ;;  %v1789_v11 = vld [vmem:[#allocation5 + $0x3d4] sm:$0xf] }
  0x39   :  { %v1554_v22 = vor.u32 %v1764_v14, %v1551_v15  ;;  %v1760_v23 = vld [vmem:[#allocation5 + $0x2e4] sm:$0xf0]  ;;  %v1692_v24 = vld [vmem:[#allocation5 + $0xcc] sm:$0xf]  ;;  %v1655_v12 = vld [vmem:[#allocation5 + $0x3f0] sm:$0xf0]  ;;  %v1398_v14 = vor.u32 %v1729_v2, %v1397_v1 }
  0x3a   :  { %921 = vmatpush.bf16.msrb.mxu0 %v1358_v53  ;;  %947 = vmatpush.bf16.msrb.mxu2 %v1362_v57  ;;  %v1263_v25 = vld [vmem:[#allocation5 + $0xe8] sm:$0xf0]  ;;  %v1518_v29 = vor.u32 %v1760_v23, %v1517_v21  ;;  %v1229_v31 = vld [vmem:[#allocation5 + $0x88] sm:$0xf]  ;;  %v1621_v19 = vld [vmem:[#allocation5 + $0x390] sm:$0xf]  ;;  %v1658_v20 = vor.u32 %v1789_v11, %v1655_v12 }
  0x3b   :  { %v1756_v26 = vld [vmem:[#allocation5 + $0x2cc] sm:$0xf]  ;;  %v1266_v30 = vor.u32 %v1692_v24, %v1263_v25  ;;  %v1688_v32 = vld [vmem:[#allocation5 + $0xa4] sm:$0xf0]  ;;  %v1785_v21 = vld [vmem:[#allocation5 + $0x3ac] sm:$0xf0] }
  0x3c   :  { %934 = vmatpush.bf16.msrb.mxu1 %v1614_v56  ;;  %960 = vmatpush.bf16.msrb.mxu3 %v1618_v61  ;;  %v1519_v27 = vld [vmem:[#allocation5 + $0x2e8] sm:$0xf0]  ;;  %v1485_v33 = vld [vmem:[#allocation5 + $0x288] sm:$0xf]  ;;  %v1230_v40 = vor.u32 %v1688_v32, %v1229_v31  ;;  %v1367_v23 = vld [vmem:[#allocation5 + $0x1b0] sm:$0xf0] }
  0x3d   :  { %v1522_v34 = vor.u32 %v1756_v26, %v1519_v27  ;;  %v1752_v35 = vld [vmem:[#allocation5 + $0x2a4] sm:$0xf0]  ;;  %v1684_v36 = vld [vmem:[#allocation5 + $0x8c] sm:$0xf]  ;;  %v1781_v24 = vld [vmem:[#allocation5 + $0x394] sm:$0xf]  ;;  %v1622_v27 = vor.u32 %v1785_v21, %v1621_v19 }
  0x3e   :  { %922 = vmatpush.bf16.msrb.mxu0 %v1326_v4  ;;  %948 = vmatpush.bf16.msrb.mxu2 %v1330_v6  ;;  %v1231_v37 = vld [vmem:[#allocation5 + $0xa8] sm:$0xf0]  ;;  %v1486_v41 = vor.u32 %v1752_v35, %v1485_v33  ;;  %v1197_v43 = vld [vmem:[#allocation5 + $0x48] sm:$0xf]  ;;  %v1653_v4 = vld [vmem:[#allocation5 + $0x3d0] sm:$0xf] }
  0x3f   :  { %v1748_v38 = vld [vmem:[#allocation5 + $0x28c] sm:$0xf]  ;;  %v1234_v42 = vor.u32 %v1684_v36, %v1231_v37  ;;  %v1680_v44 = vld [vmem:[#allocation5 + $0x64] sm:$0xf0]  ;;  %v1793_v6 = vld [vmem:[#allocation5 + $0x3ec] sm:$0xf0] }
  0x40   :  { %935 = vmatpush.bf16.msrb.mxu1 %v1582_v5  ;;  %961 = vmatpush.bf16.msrb.mxu3 %v1586_v10  ;;  %v1487_v39 = vld [vmem:[#allocation5 + $0x2a8] sm:$0xf0]  ;;  %v1453_v45 = vld [vmem:[#allocation5 + $0x248] sm:$0xf]  ;;  %v1198_v52 = vor.u32 %v1680_v44, %v1197_v43  ;;  %v1654_v15 = vor.u32 %v1793_v6, %v1653_v4  ;;  %v1623_v25 = vld [vmem:[#allocation5 + $0x3b0] sm:$0xf0] }
  0x41   :  { %v1490_v46 = vor.u32 %v1748_v38, %v1487_v39  ;;  %v1744_v47 = vld [vmem:[#allocation5 + $0x264] sm:$0xf0]  ;;  %v1676_v48 = vld [vmem:[#allocation5 + $0x4c] sm:$0xf]  ;;  %v1589_v31 = vld [vmem:[#allocation5 + $0x350] sm:$0xf]  ;;  %v1626_v32 = vor.u32 %v1781_v24, %v1623_v25 }
  0x42   :  { %923 = vmatpush.bf16.msrb.mxu0 %v1294_v16  ;;  %949 = vmatpush.bf16.msrb.mxu2 %v1298_v18  ;;  %v1199_v49 = vld [vmem:[#allocation5 + $0x68] sm:$0xf0]  ;;  %v1165_v53 = vld [vmem:[#allocation5 + $0x8] sm:$0xf]  ;;  %v1454_v56 = vor.u32 %v1744_v47, %v1453_v45  ;;  %v1402_v16 = vor.u32 %v1725_v7, %v1399_v8  ;;  %v1721_v18 = vld [vmem:[#allocation5 + $0x1ac] sm:$0xf0] }
  0x43   :  { %v1740_v50 = vld [vmem:[#allocation5 + $0x24c] sm:$0xf]  ;;  %v1672_v54 = vld [vmem:[#allocation5 + $0x24] sm:$0xf0]  ;;  %v1202_v57 = vor.u32 %v1676_v48, %v1199_v49  ;;  %v1777_v33 = vld [vmem:[#allocation5 + $0x36c] sm:$0xf0] }
  0x44   :  { %936 = vmatpush.bf16.msrb.mxu1 %v1550_v17  ;;  %962 = vmatpush.bf16.msrb.mxu3 %v1554_v22  ;;  %v1455_v51 = vld [vmem:[#allocation5 + $0x268] sm:$0xf0]  ;;  %v1421_v58 = vld [vmem:[#allocation5 + $0x208] sm:$0xf]  ;;  %v1166_v5 = vor.u32 %v1672_v54, %v1165_v53  ;;  %v1365_v17 = vld [vmem:[#allocation5 + $0x190] sm:$0xf]  ;;  %v1590_v39 = vor.u32 %v1777_v33, %v1589_v31 }
  0x45   :  { %v1736_v59 = vld [vmem:[#allocation5 + $0x224] sm:$0xf0]  ;;  %v1668_v60 = vld [vmem:[#allocation5 + $0xc] sm:$0xf]  ;;  %v1458_v61 = vor.u32 %v1740_v50, %v1455_v51  ;;  %v1717_v22 = vld [vmem:[#allocation5 + $0x194] sm:$0xf]  ;;  %v1366_v26 = vor.u32 %v1721_v18, %v1365_v17 }
  0x46   :  { %924 = vmatpush.bf16.msrb.mxu0 %v1262_v28  ;;  %950 = vmatpush.bf16.msrb.mxu2 %v1266_v30  ;;  %v1167_v62 = vld [vmem:[#allocation5 + $0x28] sm:$0xf0]  ;;  %v1422_v9 = vor.u32 %v1736_v59, %v1421_v58  ;;  %v1370_v28 = vor.u32 %v1717_v22, %v1367_v23  ;;  %v1713_v30 = vld [vmem:[#allocation5 + $0x16c] sm:$0xf0]  ;;  %v1335_v35 = vld [vmem:[#allocation5 + $0x170] sm:$0xf0] }
  0x47   :  { %v1732_v63 = vld [vmem:[#allocation5 + $0x20c] sm:$0xf]  ;;  %v1170_v10 = vor.u32 %v1668_v60, %v1167_v62  ;;  %v1773_v36 = vld [vmem:[#allocation5 + $0x354] sm:$0xf]  ;;  %v1557_v43 = vld [vmem:[#allocation5 + $0x310] sm:$0xf] }
  0x48   :  { %937 = vmatpush.bf16.msrb.mxu1 %v1518_v29  ;;  %963 = vmatpush.bf16.msrb.mxu3 %v1522_v34  ;;  %v1423_v0 = vld [vmem:[#allocation5 + $0x228] sm:$0xf0]  ;;  %v1333_v29 = vld [vmem:[#allocation5 + $0x150] sm:$0xf]  ;;  %v1709_v34 = vld [vmem:[#allocation5 + $0x154] sm:$0xf] }
  0x49   :  { %v1426_v13 = vor.u32 %v1732_v63, %v1423_v0  ;;  %v1591_v37 = vld [vmem:[#allocation5 + $0x370] sm:$0xf0]  ;;  %v1334_v38 = vor.u32 %v1713_v30, %v1333_v29  ;;  %v1769_v45 = vld [vmem:[#allocation5 + $0x32c] sm:$0xf0] }
  0x4a   :  { %925 = vmatpush.bf16.msrb.mxu0 %v1230_v40  ;;  %951 = vmatpush.bf16.msrb.mxu2 %v1234_v42  ;;  %v1338_v40 = vor.u32 %v1709_v34, %v1335_v35  ;;  %v1705_v42 = vld [vmem:[#allocation5 + $0x12c] sm:$0xf0]  ;;  %v1594_v44 = vor.u32 %v1773_v36, %v1591_v37  ;;  %v1303_v47 = vld [vmem:[#allocation5 + $0x130] sm:$0xf0]  ;;  %v1558_v51 = vor.u32 %v1769_v45, %v1557_v43  ;;  %v1405_v36 = vld [vmem:[#allocation5 + $0x1d8] sm:$0xf] }
  0x4b   :  { %v1765_v48 = vld [vmem:[#allocation5 + $0x314] sm:$0xf]  ;;  %v1269_v53 = vld [vmem:[#allocation5 + $0xd0] sm:$0xf]  ;;  %v1730_v37 = vld [vmem:[#allocation5 + $0x1f4] sm:$0xf0] }
  0x4c   :  { %938 = vmatpush.bf16.msrb.mxu1 %v1486_v41  ;;  %964 = vmatpush.bf16.msrb.mxu3 %v1490_v46  ;;  %v1301_v41 = vld [vmem:[#allocation5 + $0x110] sm:$0xf]  ;;  %v1701_v46 = vld [vmem:[#allocation5 + $0x114] sm:$0xf]  ;;  %v1790_v45 = vld [vmem:[#allocation5 + $0x3dc] sm:$0xf] }
  0x4d   :  { %v1559_v49 = vld [vmem:[#allocation5 + $0x330] sm:$0xf0]  ;;  %v1302_v50 = vor.u32 %v1705_v42, %v1301_v41  ;;  %v1697_v54 = vld [vmem:[#allocation5 + $0xec] sm:$0xf0]  ;;  %v1726_v41 = vld [vmem:[#allocation5 + $0x1dc] sm:$0xf] }
  0x4e   :  { %926 = vmatpush.bf16.msrb.mxu0 %v1198_v52  ;;  %952 = vmatpush.bf16.msrb.mxu2 %v1202_v57  ;;  %v1306_v52 = vor.u32 %v1701_v46, %v1303_v47  ;;  %v1562_v57 = vor.u32 %v1765_v48, %v1559_v49  ;;  %v1761_v58 = vld [vmem:[#allocation5 + $0x2ec] sm:$0xf0]  ;;  %v1693_v59 = vld [vmem:[#allocation5 + $0xd4] sm:$0xf]  ;;  %v1270_v63 = vor.u32 %v1697_v54, %v1269_v53  ;;  %v1407_v42 = vld [vmem:[#allocation5 + $0x1f8] sm:$0xf0] }
  0x4f   :  { %v1271_v60 = vld [vmem:[#allocation5 + $0xf0] sm:$0xf0]  ;;  %v1237_v2 = vld [vmem:[#allocation5 + $0x90] sm:$0xf]  ;;  %v1663_v46 = vld [vmem:[#allocation5 + $0x3f8] sm:$0xf0]  ;;  %v1406_v48 = vor.u32 %v1730_v37, %v1405_v36 }
  0x50   :  { %939 = vmatpush.bf16.msrb.mxu1 %v1454_v56  ;;  %965 = vmatpush.bf16.msrb.mxu3 %v1458_v61  ;;  %v1525_v56 = vld [vmem:[#allocation5 + $0x2d0] sm:$0xf]  ;;  %v1757_v61 = vld [vmem:[#allocation5 + $0x2d4] sm:$0xf]  ;;  %v1274_v1 = vor.u32 %v1693_v59, %v1271_v60  ;;  %v1629_v53 = vld [vmem:[#allocation5 + $0x398] sm:$0xf]  ;;  %v1666_v54 = vor.u32 %v1790_v45, %v1663_v46 }
  0x51   :  { %v1527_v62 = vld [vmem:[#allocation5 + $0x2f0] sm:$0xf0]  ;;  %v1526_v0 = vor.u32 %v1761_v58, %v1525_v56  ;;  %v1689_v4 = vld [vmem:[#allocation5 + $0xac] sm:$0xf0]  ;;  %v1786_v56 = vld [vmem:[#allocation5 + $0x3b4] sm:$0xf0] }
  0x52   :  { %927 = vmatpush.bf16.msrb.mxu0 %v1166_v5  ;;  %953 = vmatpush.bf16.msrb.mxu2 %v1170_v10  ;;  %v1493_v5 = vld [vmem:[#allocation5 + $0x290] sm:$0xf]  ;;  %v1530_v6 = vor.u32 %v1757_v61, %v1527_v62  ;;  %v1685_v8 = vld [vmem:[#allocation5 + $0x94] sm:$0xf]  ;;  %v1238_v12 = vor.u32 %v1689_v4, %v1237_v2  ;;  %v1375_v58 = vld [vmem:[#allocation5 + $0x1b8] sm:$0xf0]  ;;  %v1630_v62 = vor.u32 %v1786_v56, %v1629_v53 }
  0x53   :  { %v1753_v7 = vld [vmem:[#allocation5 + $0x2ac] sm:$0xf0]  ;;  %v1749_v10 = vld [vmem:[#allocation5 + $0x294] sm:$0xf]  ;;  %v1782_v59 = vld [vmem:[#allocation5 + $0x39c] sm:$0xf] }
  0x54   :  { %940 = vmatpush.bf16.msrb.mxu1 %v1422_v9  ;;  %966 = vmatpush.bf16.msrb.mxu3 %v1426_v13  ;;  %v1239_v9 = vld [vmem:[#allocation5 + $0xb0] sm:$0xf0]  ;;  %v1494_v13 = vor.u32 %v1753_v7, %v1493_v5  ;;  %v1461_v17 = vld [vmem:[#allocation5 + $0x250] sm:$0xf]  ;;  %v1631_v60 = vld [vmem:[#allocation5 + $0x3b8] sm:$0xf0] }
  0x55   :  { %954 = vmatmul.bf16.vlgmr.msrb.gmra.mxu2 %v1967_v55  ;;  %928 = vmatmul.bf16.vlgmr.msrb.gmra.mxu0 %v1967_v55  ;;  %v1495_v11 = vld [vmem:[#allocation5 + $0x2b0] sm:$0xf0]  ;;  %v1745_v19 = vld [vmem:[#allocation5 + $0x26c] sm:$0xf0]  ;;  %v1597_v2 = vld [vmem:[#allocation5 + $0x358] sm:$0xf]  ;;  %v1634_v4 = vor.u32 %v1782_v59, %v1631_v60 }
  0x56   :  { %972 = vmatpush.bf16.msra.mxu0 %v1398_v14  ;;  %998 = vmatpush.bf16.msra.mxu2 %v1402_v16  ;;  %v1242_v14 = vor.u32 %v1685_v8, %v1239_v9  ;;  %v1681_v16 = vld [vmem:[#allocation5 + $0x6c] sm:$0xf0]  ;;  %v1498_v18 = vor.u32 %v1749_v10, %v1495_v11  ;;  %v1207_v21 = vld [vmem:[#allocation5 + $0x70] sm:$0xf0]  ;;  %v1778_v5 = vld [vmem:[#allocation5 + $0x374] sm:$0xf0] }
  0x57   :  { %967 = vmatmul.bf16.vlgmr.msrb.gmra.mxu3 %v1970_v3  ;;  %941 = vmatmul.bf16.vlgmr.msrb.gmra.mxu1 %v1970_v3  ;;  %v1741_v22 = vld [vmem:[#allocation5 + $0x254] sm:$0xf]  ;;  %v1173_v25 = vld [vmem:[#allocation5 + $0x10] sm:$0xf]  ;;  %v1343_v7 = vld [vmem:[#allocation5 + $0x178] sm:$0xf0]  ;;  %v1598_v11 = vor.u32 %v1778_v5, %v1597_v2 }
  0x58   :  { %985 = vmatpush.bf16.msra.mxu1 %v1654_v15  ;;  %1011 = vmatpush.bf16.msra.mxu3 %v1658_v20  ;;  %v1205_v15 = vld [vmem:[#allocation5 + $0x50] sm:$0xf]  ;;  %v1677_v20 = vld [vmem:[#allocation5 + $0x54] sm:$0xf]  ;;  %v1774_v8 = vld [vmem:[#allocation5 + $0x35c] sm:$0xf] }
  0x59   :  { %v1463_v23 = vld [vmem:[#allocation5 + $0x270] sm:$0xf0]  ;;  %v1206_v24 = vor.u32 %v1681_v16, %v1205_v15  ;;  %v1429_v29 = vld [vmem:[#allocation5 + $0x210] sm:$0xf]  ;;  %v1599_v9 = vld [vmem:[#allocation5 + $0x378] sm:$0xf0] }
  0x5a   :  { %973 = vmatpush.bf16.msra.mxu0 %v1366_v26  ;;  %999 = vmatpush.bf16.msra.mxu2 %v1370_v28  ;;  %v1673_v26 = vld [vmem:[#allocation5 + $0x2c] sm:$0xf0]  ;;  %v1210_v28 = vor.u32 %v1677_v20, %v1207_v21  ;;  %v1669_v31 = vld [vmem:[#allocation5 + $0x14] sm:$0xf]  ;;  %v1565_v15 = vld [vmem:[#allocation5 + $0x318] sm:$0xf]  ;;  %v1602_v16 = vor.u32 %v1774_v8, %v1599_v9 }
  0x5b   :  { %v1737_v30 = vld [vmem:[#allocation5 + $0x22c] sm:$0xf0]  ;;  %v1175_v33 = vld [vmem:[#allocation5 + $0x30] sm:$0xf0]  ;;  %v1766_v20 = vld [vmem:[#allocation5 + $0x31c] sm:$0xf] }
  0x5c   :  { %986 = vmatpush.bf16.msra.mxu1 %v1622_v27  ;;  %1012 = vmatpush.bf16.msra.mxu3 %v1626_v32  ;;  %v1462_v27 = vor.u32 %v1745_v19, %v1461_v17  ;;  %v1466_v32 = vor.u32 %v1741_v22, %v1463_v23  ;;  %v1733_v34 = vld [vmem:[#allocation5 + $0x214] sm:$0xf]  ;;  %v1430_v43 = vor.u32 %v1737_v30, %v1429_v29  ;;  %v1770_v17 = vld [vmem:[#allocation5 + $0x334] sm:$0xf0]  ;;  %v1311_v19 = vld [vmem:[#allocation5 + $0x138] sm:$0xf0] }
  0x5d   :  { %v1431_v35 = vld [vmem:[#allocation5 + $0x230] sm:$0xf0]  ;;  %v1567_v21 = vld [vmem:[#allocation5 + $0x338] sm:$0xf0]  ;;  %v1566_v23 = vor.u32 %v1770_v17, %v1565_v15  ;;  %v1762_v29 = vld [vmem:[#allocation5 + $0x2f4] sm:$0xf0] }
  0x5e   :  { %974 = vmatpush.bf16.msra.mxu0 %v1334_v38  ;;  %1000 = vmatpush.bf16.msra.mxu2 %v1338_v40  ;;  %v1661_v38 = vld [vmem:[#allocation5 + $0x3d8] sm:$0xf]  ;;  %v1434_v47 = vor.u32 %v1733_v34, %v1431_v35  ;;  %v1694_v30 = vld [vmem:[#allocation5 + $0xdc] sm:$0xf] }
  0x5f   :  { %v1794_v40 = vld [vmem:[#allocation5 + $0x3f4] sm:$0xf0]  ;;  %v1503_v45 = vld [vmem:[#allocation5 + $0x2b8] sm:$0xf0] }
  0x60   :  { %987 = vmatpush.bf16.msra.mxu1 %v1590_v39  ;;  %1013 = vmatpush.bf16.msra.mxu3 %v1594_v44  ;;  %v1174_v39 = vor.u32 %v1673_v26, %v1173_v25  ;;  %v1178_v44 = vor.u32 %v1669_v31, %v1175_v33  ;;  %v1662_v49 = vor.u32 %v1794_v40, %v1661_v38  ;;  %v1277_v25 = vld [vmem:[#allocation5 + $0xd8] sm:$0xf]  ;;  %v1279_v31 = vld [vmem:[#allocation5 + $0xf8] sm:$0xf0] }
  0x61   :  { %v1698_v26 = vld [vmem:[#allocation5 + $0xf4] sm:$0xf0]  ;;  %v1535_v33 = vld [vmem:[#allocation5 + $0x2f8] sm:$0xf0]  ;;  %v1282_v36 = vor.u32 %v1694_v30, %v1279_v31 }
  0x62   :  { %975 = vmatpush.bf16.msra.mxu0 %v1302_v50  ;;  %1001 = vmatpush.bf16.msra.mxu2 %v1306_v52  ;;  %v1410_v50 = vor.u32 %v1726_v41, %v1407_v42  ;;  %v1722_v52 = vld [vmem:[#allocation5 + $0x1b4] sm:$0xf0]  ;;  %v1278_v34 = vor.u32 %v1698_v26, %v1277_v25  ;;  %v1686_v42 = vld [vmem:[#allocation5 + $0x9c] sm:$0xf] }
  0x63   :  { %v1245_v37 = vld [vmem:[#allocation5 + $0x98] sm:$0xf]  ;;  %v1215_v56 = vld [vmem:[#allocation5 + $0x78] sm:$0xf0] }
  0x64   :  { %988 = vmatpush.bf16.msra.mxu1 %v1558_v51  ;;  %1014 = vmatpush.bf16.msra.mxu3 %v1562_v57  ;;  %v1373_v51 = vld [vmem:[#allocation5 + $0x198] sm:$0xf]  ;;  %v1718_v57 = vld [vmem:[#allocation5 + $0x19c] sm:$0xf] }
  0x65   :  { %v1374_v61 = vor.u32 %v1722_v52, %v1373_v51  ;;  %v1690_v38 = vld [vmem:[#allocation5 + $0xb4] sm:$0xf0]  ;;  %v1183_v5 = vld [vmem:[#allocation5 + $0x38] sm:$0xf0] }
  0x66   :  { %976 = vmatpush.bf16.msra.mxu0 %v1270_v63  ;;  %1002 = vmatpush.bf16.msra.mxu2 %v1274_v1  ;;  %v1378_v63 = vor.u32 %v1718_v57, %v1375_v58  ;;  %v1714_v1 = vld [vmem:[#allocation5 + $0x174] sm:$0xf0]  ;;  %v1246_v46 = vor.u32 %v1690_v38, %v1245_v37  ;;  %v1742_v57 = vld [vmem:[#allocation5 + $0x25c] sm:$0xf] }
  0x67   :  { %v1754_v41 = vld [vmem:[#allocation5 + $0x2b4] sm:$0xf0]  ;;  %v1471_v58 = vld [vmem:[#allocation5 + $0x278] sm:$0xf0] }
  0x68   :  { %989 = vmatpush.bf16.msra.mxu1 %v1526_v0  ;;  %1015 = vmatpush.bf16.msra.mxu3 %v1530_v6  ;;  %v1341_v0 = vld [vmem:[#allocation5 + $0x158] sm:$0xf]  ;;  %v1710_v6 = vld [vmem:[#allocation5 + $0x15c] sm:$0xf] }
  0x69   :  { %v1342_v10 = vor.u32 %v1714_v1, %v1341_v0  ;;  %v1469_v51 = vld [vmem:[#allocation5 + $0x258] sm:$0xf]  ;;  %v1474_v1 = vor.u32 %v1742_v57, %v1471_v58 }
  0x6a   :  { %977 = vmatpush.bf16.msra.mxu0 %v1238_v12  ;;  %1003 = vmatpush.bf16.msra.mxu2 %v1242_v14  ;;  %v1346_v12 = vor.u32 %v1710_v6, %v1343_v7  ;;  %v1706_v14 = vld [vmem:[#allocation5 + $0x134] sm:$0xf0]  ;;  %v1734_v6 = vld [vmem:[#allocation5 + $0x21c] sm:$0xf] }
  0x6b   :  { %v1746_v53 = vld [vmem:[#allocation5 + $0x274] sm:$0xf0]  ;;  %v1439_v7 = vld [vmem:[#allocation5 + $0x238] sm:$0xf0] }
  0x6c   :  { %990 = vmatpush.bf16.msra.mxu1 %v1494_v13  ;;  %1016 = vmatpush.bf16.msra.mxu3 %v1498_v18  ;;  %v1309_v13 = vld [vmem:[#allocation5 + $0x118] sm:$0xf]  ;;  %v1702_v18 = vld [vmem:[#allocation5 + $0x11c] sm:$0xf]  ;;  %v1470_v60 = vor.u32 %v1746_v53, %v1469_v51 }
  0x6d   :  { %v1310_v22 = vor.u32 %v1706_v14, %v1309_v13  ;;  %v1437_v0 = vld [vmem:[#allocation5 + $0x218] sm:$0xf] }
  0x6e   :  { %978 = vmatpush.bf16.msra.mxu0 %v1206_v24  ;;  %1004 = vmatpush.bf16.msra.mxu2 %v1210_v28  ;;  %v1314_v24 = vor.u32 %v1702_v18, %v1311_v19  ;;  %v1570_v28 = vor.u32 %v1766_v20, %v1567_v21  ;;  %v1738_v2 = vld [vmem:[#allocation5 + $0x234] sm:$0xf0] }
  0x6f   :  { %v1438_v9 = vor.u32 %v1738_v2, %v1437_v0 }
  0x70   :  { %991 = vmatpush.bf16.msra.mxu1 %v1462_v27  ;;  %1017 = vmatpush.bf16.msra.mxu3 %v1466_v32  ;;  %v1533_v27 = vld [vmem:[#allocation5 + $0x2d8] sm:$0xf]  ;;  %v1758_v32 = vld [vmem:[#allocation5 + $0x2dc] sm:$0xf] }
  0x71   :  { %v1534_v35 = vor.u32 %v1762_v29, %v1533_v27  ;;  %v1538_v40 = vor.u32 %v1758_v32, %v1535_v33 }
  0x72   :  { %979 = vmatpush.bf16.msra.mxu0 %v1174_v39  ;;  %1005 = vmatpush.bf16.msra.mxu2 %v1178_v44  ;;  %v1501_v39 = vld [vmem:[#allocation5 + $0x298] sm:$0xf]  ;;  %v1750_v44 = vld [vmem:[#allocation5 + $0x29c] sm:$0xf] }
  0x73   :  { %v1506_v52 = vor.u32 %v1750_v44, %v1503_v45 }
  0x74   :  { %992 = vmatpush.bf16.msra.mxu1 %v1430_v43  ;;  %1018 = vmatpush.bf16.msra.mxu3 %v1434_v47  ;;  %v1247_v43 = vld [vmem:[#allocation5 + $0xb8] sm:$0xf0]  ;;  %v1502_v47 = vor.u32 %v1754_v41, %v1501_v39 }
  0x75   :  { %1006 = vmatmul.bf16.vlgmr.msra.gmra.mxu2 %v1967_v55  ;;  %980 = vmatmul.bf16.vlgmr.msra.gmra.mxu0 %v1967_v55 }
  0x76   :  { %1024 = vmatpush.bf16.msrb.mxu0 %v1406_v48  ;;  %1050 = vmatpush.bf16.msrb.mxu2 %v1410_v50  ;;  %v1250_v48 = vor.u32 %v1686_v42, %v1247_v43  ;;  %v1682_v50 = vld [vmem:[#allocation5 + $0x74] sm:$0xf0] }
  0x77   :  { %1019 = vmatmul.bf16.vlgmr.msra.gmra.mxu3 %v1970_v3  ;;  %993 = vmatmul.bf16.vlgmr.msra.gmra.mxu1 %v1970_v3 }
  0x78   :  { %1037 = vmatpush.bf16.msrb.mxu1 %v1662_v49  ;;  %1063 = vmatpush.bf16.msrb.mxu3 %v1666_v54  ;;  %v1213_v49 = vld [vmem:[#allocation5 + $0x58] sm:$0xf]  ;;  %v1678_v54 = vld [vmem:[#allocation5 + $0x5c] sm:$0xf] }
  0x79   :  { %v1214_v59 = vor.u32 %v1682_v50, %v1213_v49 }
  0x7a   :  { %1025 = vmatpush.bf16.msrb.mxu0 %v1374_v61  ;;  %1051 = vmatpush.bf16.msrb.mxu2 %v1378_v63  ;;  %v1218_v61 = vor.u32 %v1678_v54, %v1215_v56  ;;  %v1674_v63 = vld [vmem:[#allocation5 + $0x34] sm:$0xf0] }
  0x7c   :  { %1038 = vmatpush.bf16.msrb.mxu1 %v1630_v62  ;;  %1064 = vmatpush.bf16.msrb.mxu3 %v1634_v4  ;;  %v1181_v62 = vld [vmem:[#allocation5 + $0x18] sm:$0xf]  ;;  %v1670_v4 = vld [vmem:[#allocation5 + $0x1c] sm:$0xf] }
  0x7d   :  { %v1182_v8 = vor.u32 %v1674_v63, %v1181_v62 }
  0x7e   :  { %1026 = vmatpush.bf16.msrb.mxu0 %v1342_v10  ;;  %1052 = vmatpush.bf16.msrb.mxu2 %v1346_v12  ;;  %v1186_v10 = vor.u32 %v1670_v4, %v1183_v5  ;;  %v1987_v12 = vld [vmem:[#allocation7] sm:$0xff] }
  0x7f   :  { %v212_v13 = vperm.slane %v1987_v12, 0  ;;  %v215_v37 = vperm.slane %v1987_v12, 3  ;;  %v216_v44 = vperm.slane %v1987_v12, 4  ;;  %v217_v45 = vperm.slane %v1987_v12, 5 }
  0x80   :  { %1039 = vmatpush.bf16.msrb.mxu1 %v1598_v11  ;;  %1065 = vmatpush.bf16.msrb.mxu3 %v1602_v16  ;;  %v1442_v11 = vor.u32 %v1734_v6, %v1439_v7  ;;  %v213_v16 = vperm.slane %v1987_v12, 1  ;;  %v1108_v7 = vld [vmem:[#allocation8] sm:$0xff] }
  0x82   :  { %1027 = vmatpush.bf16.msrb.mxu0 %v1310_v22  ;;  %1053 = vmatpush.bf16.msrb.mxu2 %v1314_v24 }
  0x84   :  { %1040 = vmatpush.bf16.msrb.mxu1 %v1566_v23  ;;  %1066 = vmatpush.bf16.msrb.mxu3 %v1570_v28 }
  0x86   :  { %1028 = vmatpush.bf16.msrb.mxu0 %v1278_v34  ;;  %1054 = vmatpush.bf16.msrb.mxu2 %v1282_v36  ;;  %v214_v36 = vperm.slane %v1987_v12, 2 }
  0x88   :  { %1041 = vmatpush.bf16.msrb.mxu1 %v1534_v35  ;;  %1067 = vmatpush.bf16.msrb.mxu3 %v1538_v40 }
  0x8a   :  { %1029 = vmatpush.bf16.msrb.mxu0 %v1246_v46  ;;  %1055 = vmatpush.bf16.msrb.mxu2 %v1250_v48 }
  0x8c   :  { %1042 = vmatpush.bf16.msrb.mxu1 %v1502_v47  ;;  %1068 = vmatpush.bf16.msrb.mxu3 %v1506_v52 }
  0x8e   :  { %1030 = vmatpush.bf16.msrb.mxu0 %v1214_v59  ;;  %1056 = vmatpush.bf16.msrb.mxu2 %v1218_v61 }
  0x90   :  { %1043 = vmatpush.bf16.msrb.mxu1 %v1470_v60  ;;  %1069 = vmatpush.bf16.msrb.mxu3 %v1474_v1  ;;  %v218_v1 = vperm.slane %v1987_v12, 6 }
  0x92   :  { %1031 = vmatpush.bf16.msrb.mxu0 %v1182_v8  ;;  %1057 = vmatpush.bf16.msrb.mxu2 %v1186_v10  ;;  %v219_v10 = vperm.slane %v1987_v12, 7 }
  0x94   :  { %1044 = vmatpush.bf16.msrb.mxu1 %v1438_v9  ;;  %1070 = vmatpush.bf16.msrb.mxu3 %v1442_v11 }
  0x95   :  { %1032 = vmatmul.bf16.vlgmr.msrb.gmra.mxu0 %v1967_v55  ;;  %1058 = vmatmul.bf16.vlgmr.msrb.gmra.mxu2 %v1967_v55 }
  0x97   :  { %1045 = vmatmul.bf16.vlgmr.msrb.gmra.mxu1 %v1970_v3  ;;  %1071 = vmatmul.bf16.vlgmr.msrb.gmra.mxu3 %v1970_v3 }
  0xb2   :  { %v877_v14 = vpop.f32.mrf.mxu0 }
  0xb3   :  { %v878_v15 = vadd.f32 %v877_v14, %v212_v13  ;;  %v1110_v14 = vperm.slane %v1108_v7, 0 }
  0xb4   :  { %v890_v17 = vpop.f32.mrf.mxu1 }
  0xb5   :  { %v891_v18 = vadd.f32 %v890_v17, %v878_v15  ;;  %v1111_v15 = vperm.slane %v1108_v7, 1 }
  0xb8   :  { %v903_v19 = vpop.f32.mrf.mxu2 }
  0xb9   :  { %v904_v20 = vadd.f32 %v903_v19, %v213_v16 }
  0xba   :  { %v879_v21 = vpop.f32.mrf.mxu0  ;;  %v916_v22 = vpop.f32.mrf.mxu3 }
  0xbb   :  { %v917_v23 = vadd.f32 %v916_v22, %v904_v20 }
  0xbc   :  { %v892_v24 = vpop.f32.mrf.mxu1 }
  0xbd   :  { %v1076_v25 = vpack.c.bf16 %v917_v23, %v891_v18 }
  0xbf   :  { %v1080_v52 = vunpack.c.l.bf16 %v1076_v25  ;;  %v1081_v53 = vunpack.c.h.bf16 %v1076_v25 }
  0xc0   :  { %v905_v55 = vpop.f32.mrf.mxu2 }
  0xc1   :  { %1801 = vtanh.f32 %v1080_v52 }
  0xc2   :  { %v918_v26 = vpop.f32.mrf.mxu3  ;;  %1803 = vtanh.f32 %v1081_v53  ;;  %v1117_v53 = vperm.slane %v1108_v7, 7 }
  0xc7   :  { %v1802_v61 = vpop.eup %1801 }
  0xc8   :  { %v1804_v62 = vpop.eup %1803 }
  0xc9   :  { %v1096_v4 = vpack.c.bf16 %v1804_v62, %v1802_v61 }
  0xcb   :  { %v1100_v11 = vunpack.c.l.bf16 %v1096_v4  ;;  %v1101_v13 = vunpack.c.h.bf16 %v1096_v4 }
  0xcd   :  { %v1126_v25 = vmul.f32 %v1110_v14, %v1100_v11  ;;  %v1127_v55 = vmul.f32 %v1111_v15, %v1101_v13 }
  0xd2   :  { %v929_v3 = vpop.f32.mrf.mxu0 }
  0xd3   :  { %v930_v40 = vadd.f32 %v929_v3, %v214_v36 }
  0xd4   :  { %v942_v27 = vpop.f32.mrf.mxu1 }
  0xd5   :  { %v943_v46 = vadd.f32 %v942_v27, %v930_v40  ;;  %v1112_v27 = vperm.slane %v1108_v7, 2 }
  0xd8   :  { %v955_v28 = vpop.f32.mrf.mxu2 }
  0xd9   :  { %v956_v41 = vadd.f32 %v955_v28, %v215_v37 }
  0xda   :  { %v968_v29 = vpop.f32.mrf.mxu3  ;;  %v931_v30 = vpop.f32.mrf.mxu0 }
  0xdb   :  { %v969_v47 = vadd.f32 %v968_v29, %v956_v41  ;;  %v1113_v29 = vperm.slane %v1108_v7, 3  ;;  %v1134_v30 = vadd.f32 %v1127_v55, %v1126_v25 }
  0xdc   :  { %v944_v31 = vpop.f32.mrf.mxu1 }
  0xdd   :  { %v1077_v54 = vpack.c.bf16 %v969_v47, %v943_v46 }
  0xdf   :  { %v1082_v58 = vunpack.c.l.bf16 %v1077_v54  ;;  %v1083_v59 = vunpack.c.h.bf16 %v1077_v54 }
  0xe0   :  { %v957_v32 = vpop.f32.mrf.mxu2 }
  0xe1   :  { %1805 = vtanh.f32 %v1082_v58 }
  0xe2   :  { %v970_v33 = vpop.f32.mrf.mxu3  ;;  %1807 = vtanh.f32 %v1083_v59 }
  0xe7   :  { %v1806_v6 = vpop.eup %1805 }
  0xe8   :  { %v1808_v8 = vpop.eup %1807 }
  0xe9   :  { %v1097_v16 = vpack.c.bf16 %v1808_v8, %v1806_v6 }
  0xeb   :  { %v1102_v3 = vunpack.c.l.bf16 %v1097_v16  ;;  %v1103_v33 = vunpack.c.h.bf16 %v1097_v16 }
  0xf2   :  { %v981_v34 = vpop.f32.mrf.mxu0 }
  0xf3   :  { %v982_v49 = vadd.f32 %v981_v34, %v216_v44  ;;  %v1128_v34 = vmul.f32 %v1112_v27, %v1102_v3 }
  0xf4   :  { %v994_v35 = vpop.f32.mrf.mxu1 }
  0xf5   :  { %v995_v56 = vadd.f32 %v994_v35, %v982_v49  ;;  %v1135_v40 = vadd.f32 %v1134_v30, %v1128_v34 }
  0xf8   :  { %v1007_v38 = vpop.f32.mrf.mxu2 }
  0xf9   :  { %v1008_v50 = vadd.f32 %v1007_v38, %v217_v45  ;;  %v1114_v38 = vperm.slane %v1108_v7, 4 }
  0xfa   :  { %v1020_v39 = vpop.f32.mrf.mxu3  ;;  %v983_v42 = vpop.f32.mrf.mxu0 }
  0xfb   :  { %v1021_v57 = vadd.f32 %v1020_v39, %v1008_v50  ;;  %v1129_v39 = vmul.f32 %v1113_v29, %v1103_v33  ;;  %v1115_v42 = vperm.slane %v1108_v7, 5 }
  0xfc   :  { %v996_v43 = vpop.f32.mrf.mxu1 }
  0xfd   :  { %v1078_v60 = vpack.c.bf16 %v1021_v57, %v995_v56  ;;  %v1136_v45 = vadd.f32 %v1135_v40, %v1129_v39 }
  0xff   :  { %v1084_v63 = vunpack.c.l.bf16 %v1078_v60  ;;  %v1085_v0 = vunpack.c.h.bf16 %v1078_v60  ;;  %v1144_v60 = vstv %s2007_s4 }
 0x100   :  { %v1009_v48 = vpop.f32.mrf.mxu2 }
 0x101   :  { %1809 = vtanh.f32 %v1084_v63  ;;  %v1116_v48 = vperm.slane %v1108_v7, 6 }
 0x102   :  { %v1022_v51 = vpop.f32.mrf.mxu3  ;;  %1811 = vtanh.f32 %v1085_v0 }
 0x107   :  { %v1810_v18 = vpop.eup %1809 }
 0x108   :  { %v1812_v23 = vpop.eup %1811 }
 0x109   :  { %v1098_v12 = vpack.c.bf16 %v1812_v23, %v1810_v18 }
 0x10b   :  { %v1104_v37 = vunpack.c.l.bf16 %v1098_v12  ;;  %v1105_v41 = vunpack.c.h.bf16 %v1098_v12 }
 0x10d   :  { %v1130_v43 = vmul.f32 %v1114_v38, %v1104_v37  ;;  %v1131_v49 = vmul.f32 %v1115_v42, %v1105_v41 }
 0x10f   :  { %v1137_v50 = vadd.f32 %v1136_v45, %v1130_v43 }
 0x111   :  { %v1138_v56 = vadd.f32 %v1137_v50, %v1131_v49 }
 0x112   :  { %v1033_v2 = vpop.f32.mrf.mxu0 }
 0x113   :  { %v1034_v9 = vadd.f32 %v1033_v2, %v218_v1 }
 0x114   :  { %v1046_v5 = vpop.f32.mrf.mxu1 }
 0x115   :  { %v1047_v19 = vadd.f32 %v1046_v5, %v1034_v9 }
 0x118   :  { %v1059_v17 = vpop.f32.mrf.mxu2 }
 0x119   :  { %v1060_v20 = vadd.f32 %v1059_v17, %v219_v10 }
 0x11a   :  { %v1072_v21 = vpop.f32.mrf.mxu3  ;;  %v1035_v22 = vpop.f32.mrf.mxu0 }
 0x11b   :  { %v1073_v26 = vadd.f32 %v1072_v21, %v1060_v20 }
 0x11c   :  { %v1048_v24 = vpop.f32.mrf.mxu1 }
 0x11d   :  { %v1079_v28 = vpack.c.bf16 %v1073_v26, %v1047_v19 }
 0x11f   :  { %v1086_v31 = vunpack.c.l.bf16 %v1079_v28  ;;  %v1087_v32 = vunpack.c.h.bf16 %v1079_v28 }
 0x120   :  { %v1061_v35 = vpop.f32.mrf.mxu2 }
 0x121   :  { %1813 = vtanh.f32 %v1086_v31 }
 0x122   :  { %v1074_v36 = vpop.f32.mrf.mxu3  ;;  %1815 = vtanh.f32 %v1087_v32 }
 0x127   :  { %v1814_v44 = vpop.eup %1813 }
 0x128   :  { %v1816_v46 = vpop.eup %1815 }
 0x129   :  { %v1099_v47 = vpack.c.bf16 %v1816_v46, %v1814_v44 }
 0x12b   :  { %v1106_v51 = vunpack.c.l.bf16 %v1099_v47  ;;  %v1107_v52 = vunpack.c.h.bf16 %v1099_v47 }
 0x12d   :  { %v1132_v54 = vmul.f32 %v1116_v48, %v1106_v51  ;;  %v1133_v57 = vmul.f32 %v1117_v53, %v1107_v52 }
 0x12f   :  { %v1139_v58 = vadd.f32 %v1138_v56, %v1132_v54 }
 0x131   :  { %v1140_v59 = vadd.f32 %v1139_v58, %v1133_v57 }
 0x133   :  { %1141 = vadd.xlane.f32.xlu0 %v1140_v59 }
 0x1a6   :  { %v1142_v61 = vpop.xlane.xlu0 %1141 }
 0x1a7   :  { %v1145_v62 = vadd.f32 %v1144_v60, %v1142_v61 }
 0x1a9   :  { %1147 = vst.msk [vmem:[%s2008_s5] sm:$0xff] %vm1146_vm0, %v1145_v62 }
 0x1aa   :  { %1152 = vsyncpa [#allocation4], 1 }
 0x1ab   :  { %1153 = vsyncpa [#allocation6], 1 }
 0x1ac   :  { %1154 = vsyncpa [#allocation9], 1 }

</bundles_post_ra>
